<compile_context>
chip_gen: v7x
topology: tpu7x:2x2x1
jax: 0.10.0
libtpu: 0.0.40
codegen_flags: <defaults>
</compile_context>

<pallas_src>
import math

import jax
import jax.numpy as jnp
from jax.experimental import pallas as pl
from jax.experimental.pallas import tpu as pltpu


def _round_up(x, m):
    return ((x + m - 1) // m) * m


# ----------------------------- Pallas kernels ------------------------------

def _xw_scale_kernel(x_ref, w_ref, dinv_ref, o_ref):
    # XW_scaled = (X @ W) * D^{-1/2}, stored bf16 (narrow operand for the A matmul).
    xw = jnp.dot(x_ref[...], w_ref[...], preferred_element_type=jnp.float32)
    o_ref[...] = (xw * dinv_ref[...]).astype(o_ref.dtype)


def _conv_agg_kernel(a_ref, xw_ref, xwd_ref, dinv_ref, b_ref, o_ref, acc_ref):
    # Accumulate A @ XW_scaled over source-node tiles; finalize adds the
    # self-loop term (A+I), the row-side D^{-1/2} scale, bias and ReLU.
    k = pl.program_id(1)

    @pl.when(k == 0)
    def _():
        acc_ref[...] = jnp.zeros_like(acc_ref)

    acc_ref[...] += jnp.dot(a_ref[...], xw_ref[...],
                            preferred_element_type=jnp.float32)

    @pl.when(k == pl.num_programs(1) - 1)
    def _():
        full = acc_ref[...] + xwd_ref[...].astype(jnp.float32)   # + I * XW_scaled
        h = dinv_ref[...] * full + b_ref[...]
        o_ref[...] = jnp.maximum(h, 0.0).astype(o_ref.dtype)


def _pool_head_kernel(onehot_ref, x_ref, invc_ref, wl_ref, bl_ref, o_ref):
    # global_mean_pool(x, batch) -> Linear(., 1) -> *100 (lane-padded output slab).
    s = jnp.dot(onehot_ref[...], x_ref[...], preferred_element_type=jnp.float32)
    mean = s * invc_ref[...]
    y = jnp.dot(mean, wl_ref[...], preferred_element_type=jnp.float32) + bl_ref[...]
    o_ref[...] = y * 100.0


# ------------------------------- Wrappers -----------------------------------

def gcn_conv_relu(a, x, w, b):
    """One GCNConv layer fused with ReLU.

    a: raw dense adjacency [N, N] (no self-loops, unnormalized); x: [N, Fin];
    w: [Fin, Fout]; b: [Fout].  Normalization D^{-1/2}(A+I)D^{-1/2} is folded
    into the kernels via the dinv vector and a finalize-time self-loop add.
    Returns [N, Fout] float32.
    """
    n, fin = x.shape
    fout = w.shape[1]

    tile = min(512, _round_up(n, 128))
    n_pad = _round_up(n, tile)
    fin_pad = _round_up(fin, 128)
    fout_pad = _round_up(fout, 128)

    # Degree of A + I (cheap reduction; no NxN normalized matrix materialized).
    deg = jnp.sum(a, axis=1, dtype=jnp.float32) + 1.0
    dinv = jax.lax.rsqrt(deg)
    dinv_pad = jnp.zeros((n_pad, 1), jnp.float32).at[:n, 0].set(dinv)

    a_pad = jnp.zeros((n_pad, n_pad), jnp.bfloat16).at[:n, :n].set(
        a.astype(jnp.bfloat16))
    x_pad = jnp.zeros((n_pad, fin_pad), jnp.bfloat16).at[:n, :fin].set(
        x.astype(jnp.bfloat16))
    w_pad = jnp.zeros((fin_pad, fout_pad), jnp.bfloat16).at[:fin, :fout].set(
        w.astype(jnp.bfloat16))
    b_pad = jnp.zeros((1, fout_pad), jnp.float32).at[0, :fout].set(
        b.astype(jnp.float32))

    # Stage 1: XW_scaled = (X @ W) * dinv, row-tiled.
    xw_scaled = pl.pallas_call(
        _xw_scale_kernel,
        out_shape=jax.ShapeDtypeStruct((n_pad, fout_pad), jnp.bfloat16),
        grid=(n_pad // tile,),
        in_specs=[
            pl.BlockSpec((tile, fin_pad), lambda i: (i, 0)),
            pl.BlockSpec((fin_pad, fout_pad), lambda i: (0, 0)),
            pl.BlockSpec((tile, 1), lambda i: (i, 0)),
        ],
        out_specs=pl.BlockSpec((tile, fout_pad), lambda i: (i, 0)),
        compiler_params=pltpu.CompilerParams(
            dimension_semantics=("parallel",)),
        cost_estimate=pl.CostEstimate(
            flops=2 * n_pad * fin_pad * fout_pad,
            transcendentals=0,
            bytes_accessed=2 * (n_pad * fin_pad + fin_pad * fout_pad
                                + n_pad * fout_pad)),
    )(x_pad, w_pad, dinv_pad)

    # Stage 2: tiled A @ XW_scaled with f32 VMEM accumulator; bias/ReLU/scale
    # only in the finalize branch; bf16 stores.
    out = pl.pallas_call(
        _conv_agg_kernel,
        out_shape=jax.ShapeDtypeStruct((n_pad, fout_pad), jnp.bfloat16),
        grid=(n_pad // tile, n_pad // tile),
        in_specs=[
            pl.BlockSpec((tile, tile), lambda i, k: (i, k)),        # A tile
            pl.BlockSpec((tile, fout_pad), lambda i, k: (k, 0)),    # XW_scaled (reduction)
            pl.BlockSpec((tile, fout_pad), lambda i, k: (i, 0)),    # XW_scaled (self-loop rows)
            pl.BlockSpec((tile, 1), lambda i, k: (i, 0)),           # dinv rows
            pl.BlockSpec((1, fout_pad), lambda i, k: (0, 0)),       # bias
        ],
        out_specs=pl.BlockSpec((tile, fout_pad), lambda i, k: (i, 0)),
        scratch_shapes=[pltpu.VMEM((tile, fout_pad), jnp.float32)],
        compiler_params=pltpu.CompilerParams(
            dimension_semantics=("parallel", "arbitrary"),
            vmem_limit_bytes=32 * 1024 * 1024),
        cost_estimate=pl.CostEstimate(
            flops=2 * n_pad * n_pad * fout_pad,
            transcendentals=0,
            bytes_accessed=2 * n_pad * n_pad + 3 * 2 * n_pad * fout_pad),
    )(a_pad, xw_scaled, xw_scaled, dinv_pad, b_pad)

    return out[:n, :fout].astype(jnp.float32)


def global_mean_pool_head(x, batch, sizes, wl, bl):
    """global_mean_pool -> Linear(F,1) -> *100.  Lane-padded output slab."""
    n, f = x.shape
    g = len(sizes)
    n_pad = _round_up(n, 128)
    f_pad = _round_up(f, 128)
    g_pad = _round_up(max(g, 8), 8)

    onehot = (batch[None, :] == jnp.arange(g, dtype=batch.dtype)[:, None]
              ).astype(jnp.float32)
    onehot_pad = jnp.zeros((g_pad, n_pad), jnp.float32).at[:g, :n].set(onehot)
    counts = jnp.asarray(sizes, jnp.float32)
    invc = jnp.zeros((g_pad, 1), jnp.float32).at[:g, 0].set(1.0 / counts)
    x_pad = jnp.zeros((n_pad, f_pad), jnp.float32).at[:n, :f].set(
        x.astype(jnp.float32))
    wl_pad = jnp.zeros((f_pad, 128), jnp.float32).at[:f, :1].set(
        wl.astype(jnp.float32))
    bl_pad = jnp.zeros((1, 128), jnp.float32).at[0, :1].set(
        bl.reshape(-1).astype(jnp.float32))

    y = pl.pallas_call(
        _pool_head_kernel,
        out_shape=jax.ShapeDtypeStruct((g_pad, 128), jnp.float32),
        grid=(1,),
        in_specs=[
            pl.BlockSpec((g_pad, n_pad), lambda i: (0, 0)),
            pl.BlockSpec((n_pad, f_pad), lambda i: (0, 0)),
            pl.BlockSpec((g_pad, 1), lambda i: (0, 0)),
            pl.BlockSpec((f_pad, 128), lambda i: (0, 0)),
            pl.BlockSpec((1, 128), lambda i: (0, 0)),
        ],
        out_specs=pl.BlockSpec((g_pad, 128), lambda i: (0, 0)),
    )(onehot_pad, x_pad, invc, wl_pad, bl_pad)
    return y[:g, 0]


# ------------------------------- JAX glue -----------------------------------

def topk_pool(x, a, batch, sizes, w, ratio=0.5):
    """TopKPooling (PyG semantics, multiplier=1, nonlinearity=tanh).

    sizes: static Python list of per-graph node counts (static shapes).
    Returns new x, adjacency, batch and sizes.
    """
    score = jnp.tanh((x @ w) / (jnp.linalg.norm(w) + 1e-12))
    perm_parts = []
    new_sizes = []
    offset = 0
    for n in sizes:
        k = int(math.ceil(ratio * n))
        s_g = score[offset:offset + n]
        idx = jnp.argsort(-s_g)[:k] + offset  # descending score within graph
        perm_parts.append(idx)
        new_sizes.append(k)
        offset += n
    perm = jnp.concatenate(perm_parts)
    x_new = x[perm] * score[perm][:, None]
    a_new = a[perm[:, None], perm[None, :]]   # single fused 2-D gather
    batch_new = batch[perm]
    return x_new, a_new, batch_new, new_sizes


# ------------------------------ Parameters ----------------------------------

def glorot(key, fan_in, fan_out):
    bound = math.sqrt(6.0 / (fan_in + fan_out))
    return jax.random.uniform(key, (fan_in, fan_out), jnp.float32, -bound, bound)


def init_params(key, input_dim, hidden_dim):
    dims = [input_dim, hidden_dim, hidden_dim // 2, hidden_dim // 4, hidden_dim // 8]
    keys = jax.random.split(key, 10)
    params = {}
    for li in range(4):
        params[f"w{li + 1}"] = glorot(keys[li], dims[li], dims[li + 1])
        params[f"b{li + 1}"] = jnp.zeros((dims[li + 1],), jnp.float32)
    for pi in range(3):
        d = dims[pi + 1]
        bound = 1.0 / math.sqrt(d)
        params[f"p{pi + 1}"] = jax.random.uniform(keys[4 + pi], (d,), jnp.float32, -bound, bound)
    fin = dims[4]
    bound = 1.0 / math.sqrt(fin)
    params["wl"] = jax.random.uniform(keys[7], (fin, 1), jnp.float32, -bound, bound)
    params["bl"] = jax.random.uniform(keys[8], (1, 1), jnp.float32, -bound, bound)
    return params


# -------------------------------- Forward -----------------------------------

def gcn_forward(x, a, batch, sizes, params):
    a = a.astype(jnp.bfloat16)  # 0/1 values are exact; halves adjacency HBM traffic
    # conv1 + act (dropout: identity in eval)
    h = gcn_conv_relu(a, x, params["w1"], params["b1"])
    h, a, batch, sizes = topk_pool(h, a, batch, sizes, params["p1"])
    # conv2 + act
    h = gcn_conv_relu(a, h, params["w2"], params["b2"])
    h, a, batch, sizes = topk_pool(h, a, batch, sizes, params["p2"])
    # conv3 + act
    h = gcn_conv_relu(a, h, params["w3"], params["b3"])
    h, a, batch, sizes = topk_pool(h, a, batch, sizes, params["p3"])
    # conv4 + act
    h = gcn_conv_relu(a, h, params["w4"], params["b4"])
    # global mean pool -> linear -> squeeze(1) * 100
    return global_mean_pool_head(h, batch, sizes, params["wl"], params["bl"])


# --------------------------------- Main --------------------------------------

if __name__ == "__main__":
    key = jax.random.PRNGKey(0)
    k_x, k_p = jax.random.split(key)

    input_dim = 16
    hidden_dim = 32
    num_graphs = 2
    nodes_per_graph = 8
    n_total = num_graphs * nodes_per_graph
    sizes = [nodes_per_graph] * num_graphs

    # Node features and batch assignment.
    x = jax.random.normal(k_x, (n_total, input_dim), jnp.float32)
    batch = jnp.repeat(jnp.arange(num_graphs, dtype=jnp.int32), nodes_per_graph)

    # Undirected ring within each graph -> edge_index (2, E), then dense A.
    src_list, dst_list = [], []
    for g in range(num_graphs):
        off = g * nodes_per_graph
        for i in range(nodes_per_graph):
            j = (i + 1) % nodes_per_graph
            src_list += [off + i, off + j]
            dst_list += [off + j, off + i]
    edge_index = jnp.array([src_list, dst_list], dtype=jnp.int32)
    a = jnp.zeros((n_total, n_total), jnp.float32).at[edge_index[1], edge_index[0]].set(1.0)

    params = init_params(k_p, input_dim, hidden_dim)

    out = gcn_forward(x, a, batch, sizes, params)
    out = jax.block_until_ready(out)
    assert out.shape == (num_graphs,)
    assert bool(jnp.all(jnp.isfinite(out)))
    # TODO(synk): dropout is a no-op (inference mode); training-mode dropout not implemented.
    # TODO(synk): TopK pooling (per-graph argsort + gather) stays in JAX glue, not Pallas.
    print("KERNEL_OK")
</pallas_src>

<mosaic_0001>
module attributes {stable_mosaic.version = 11 : i64} {
  func.func @_xw_scale_kernel(%arg0: i32, %arg1: memref<128x128xbf16, #tpu.memory_space<vmem>>, %arg2: memref<128x128xbf16, #tpu.memory_space<vmem>>, %arg3: memref<128x1xf32, #tpu.memory_space<vmem>>, %arg4: memref<128x128xbf16, #tpu.memory_space<vmem>>) attributes {dimension_semantics = [#tpu.dimension_semantics<parallel>], iteration_bounds = array<i64: 1>, scalar_prefetch = 0 : i64, scratch_operands = 0 : i64, tpu.core_type = #tpu.core_type<tc>, window_params = [{transform_indices = @transform_0, window_bounds = array<i64: 128, 128>}, {pipeline_mode = #tpu.pipeline_mode<synchronous>, transform_indices = @transform_1, window_bounds = array<i64: 128, 128>}, {transform_indices = @transform_2, window_bounds = array<i64: 128, 1>}, {transform_indices = @transform_3, window_bounds = array<i64: 128, 128>}]} {
    %c0 = arith.constant 0 : index
    %c0_0 = arith.constant 0 : index
    %0 = vector.load %arg1[%c0, %c0_0] : memref<128x128xbf16, #tpu.memory_space<vmem>>, vector<128x128xbf16>
    %c0_1 = arith.constant 0 : index
    %c0_2 = arith.constant 0 : index
    %1 = vector.load %arg2[%c0_1, %c0_2] : memref<128x128xbf16, #tpu.memory_space<vmem>>, vector<128x128xbf16>
    %cst = arith.constant dense<0.000000e+00> : vector<128x128xf32>
    %2 = tpu.matmul %0, %1, %cst {dimension_numbers = #tpu.dot_dimension_numbers<[1], [0], [0], [1], [0, 0, 1, 1], [], []>} : vector<128x128xbf16>, vector<128x128xbf16>, vector<128x128xf32> -> vector<128x128xf32>
    %c0_3 = arith.constant 0 : index
    %c0_4 = arith.constant 0 : index
    %3 = vector.load %arg3[%c0_3, %c0_4] : memref<128x1xf32, #tpu.memory_space<vmem>>, vector<128x1xf32>
    %4 = vector.broadcast %3 : vector<128x1xf32> to vector<128x128xf32>
    %5 = arith.mulf %2, %4 : vector<128x128xf32>
    %6 = arith.truncf %5 : vector<128x128xf32> to vector<128x128xbf16>
    %c0_5 = arith.constant 0 : index
    %c0_6 = arith.constant 0 : index
    %7 = vector.load %arg4[%c0_5, %c0_6] : memref<128x128xbf16, #tpu.memory_space<vmem>>, vector<128x128xbf16>
    tpu.vector_store %arg4[%c0_5, %c0_6], %6 {strides = array<i32>} : memref<128x128xbf16, #tpu.memory_space<vmem>>, vector<128x128xbf16>,
    return
  }
  func.func @transform_0(%arg0: i32) -> (i32, i32) {
    %c0_i32 = arith.constant 0 : i32
    %c0_i32_0 = arith.constant 0 : i32
    return %arg0, %c0_i32 : i32, i32
  }
  func.func @transform_1(%arg0: i32) -> (i32, i32) {
    %c0_i32 = arith.constant 0 : i32
    %c0_i32_0 = arith.constant 0 : i32
    %c0_i32_1 = arith.constant 0 : i32
    return %c0_i32, %c0_i32_0 : i32, i32
  }
  func.func @transform_2(%arg0: i32) -> (i32, i32) {
    %c0_i32 = arith.constant 0 : i32
    %c0_i32_0 = arith.constant 0 : i32
    return %arg0, %c0_i32 : i32, i32
  }
  func.func @transform_3(%arg0: i32) -> (i32, i32) {
    %c0_i32 = arith.constant 0 : i32
    %c0_i32_0 = arith.constant 0 : i32
    return %arg0, %c0_i32 : i32, i32
  }
}

</mosaic_0001>

<bundles_post_ra>
// kernel: tpu_custom_call.1
= control target key start
LH: loop header
LB: loop body
LE: loop exit
PB: predicated region body
PF: predicated region fallthrough
CT: control target
= control target key end

     0   :  { %v654_v2 = vmov 0   ;;  %s786_s0 = inlined_call_operand.vmem [shape: bf16[128,128], index: 0, kind: input, shape index: {}]   ;;  %s787_s1 = inlined_call_operand.vmem [shape: bf16[128,128], index: 1, kind: input, shape index: {}]   ;;  %s788_s2 = inlined_call_operand.vmem [shape: f32[128,1], index: 2, kind: input, shape index: {}]   ;;  %s789_s3 = inlined_call_operand.hbm [shape: bf16[128,128], index: 3, kind: output, shape index: {}]  }
   0x1   :  { %v614_v0 = vld [vmem:[%s787_s1] sm:$0xff]   ;;  %v615_v1 = vld [vmem:[%s787_s1 + $0x8] sm:$0xff]   ;;  %613 = vset.pattern.permute.xlu1 %v654_v2  ;;  %612 = vset.pattern.permute.xlu0 %v654_v2  ;;  %v616_v3 = vld [vmem:[%s787_s1 + $0x10] sm:$0xff]  }
   0x2   :  { %560 = vmatprep.subr.bf16.mxu0 %v614_v0  ;;  %592 = vmatprep.subr.bf16.mxu1 %v614_v0  ;;  %v617_v4 = vld [vmem:[%s787_s1 + $0x18] sm:$0xff]   ;;  %v622_v5 = vld [vmem:[%s786_s0] sm:$0xff]   ;;  %v619_v8 = vld [vmem:[%s787_s1 + $0x28] sm:$0xff]  }
   0x3   :  { %561 = vmatpush3.bf16.msra.mxu0 %v614_v0  ;;  %600 = vmatpush3.bf16.msra.mxu1 %v614_v0  ;;  %v623_v6 = vld [vmem:[%s786_s0 + $0x20] sm:$0xff]   ;;  %v243_v9 = vld [vmem:[%s788_s2 + $0x10] sm:$0xff]  ;;  %v244_v11 = vld [vmem:[%s788_s2 + $0x18] sm:$0xff] }
   0x4   :  { %562 = vmatprep.subr.bf16.mxu0 %v615_v1  ;;  %593 = vmatprep.subr.bf16.mxu1 %v615_v1  ;;  %v618_v7 = vld [vmem:[%s787_s1 + $0x20] sm:$0xff]   ;;  %v242_v12 = vld [vmem:[%s788_s2 + $0x8] sm:$0xff]  ;;  %v620_v13 = vld [vmem:[%s787_s1 + $0x30] sm:$0xff]  }
   0x5   :  { %576 = vmatprep.mubr.bf16.mxu0 %v622_v5  ;;  %584 = vmatprep.mubr.bf16.mxu1 %v623_v6  ;;  %v241_v10 = vld [vmem:[%s788_s2] sm:$0xff] }
   0x6   :  { %269 = vperm.xlu1 %613, %v243_v9   ;;  %259 = vperm.xlu0 %612, %v241_v10  }
   0x7   :  { %563 = vmatpush3.bf16.msra.mxu0 %v615_v1  ;;  %601 = vmatpush3.bf16.msra.mxu1 %v615_v1 }
   0x8   :  { %564 = vmatprep.subr.bf16.mxu0 %v616_v3  ;;  %594 = vmatprep.subr.bf16.mxu1 %v616_v3 }
   0xa   :  { %274 = vperm.xlu1 %613, %v244_v11   ;;  %264 = vperm.xlu0 %612, %v242_v12  }
   0xb   :  { %565 = vmatpush3.bf16.msra.mxu0 %v616_v3  ;;  %602 = vmatpush3.bf16.msra.mxu1 %v616_v3 }
   0xc   :  { %566 = vmatprep.subr.bf16.mxu0 %v617_v4  ;;  %595 = vmatprep.subr.bf16.mxu1 %v617_v4 }
   0xf   :  { %567 = vmatpush3.bf16.msra.mxu0 %v617_v4  ;;  %603 = vmatpush3.bf16.msra.mxu1 %v617_v4 }
  0x10   :  { %568 = vmatprep.subr.bf16.mxu0 %v618_v7  ;;  %596 = vmatprep.subr.bf16.mxu1 %v618_v7 }
  0x13   :  { %569 = vmatpush3.bf16.msra.mxu0 %v618_v7  ;;  %604 = vmatpush3.bf16.msra.mxu1 %v618_v7 }
  0x14   :  { %570 = vmatprep.subr.bf16.mxu0 %v619_v8  ;;  %597 = vmatprep.subr.bf16.mxu1 %v619_v8 }
  0x15   :  { %8 = vsyncpa [#allocation3], 0  ;;  %v246_v14 = vld [vmem:[%s788_s2 + $0x28] sm:$0xff]  ;;  %v245_v15 = vld [vmem:[%s788_s2 + $0x20] sm:$0xff] }
  0x16   :  { %v621_v16 = vld [vmem:[%s787_s1 + $0x38] sm:$0xff]   ;;  %284 = vperm.xlu1 %613, %v246_v14   ;;  %279 = vperm.xlu0 %612, %v245_v15   ;;  %v247_v18 = vld [vmem:[%s788_s2 + $0x30] sm:$0xff]  ;;  %v624_v19 = vld [vmem:[%s786_s0 + $0x8] sm:$0xff]  }
  0x17   :  { %571 = vmatpush3.bf16.msra.mxu0 %v619_v8  ;;  %605 = vmatpush3.bf16.msra.mxu1 %v619_v8  ;;  %v248_v17 = vld [vmem:[%s788_s2 + $0x38] sm:$0xff]  ;;  %v625_v20 = vld [vmem:[%s786_s0 + $0x28] sm:$0xff]   ;;  %v249_v22 = vld [vmem:[%s788_s2 + $0x40] sm:$0xff] }
  0x18   :  { %572 = vmatprep.subr.bf16.mxu0 %v620_v13  ;;  %598 = vmatprep.subr.bf16.mxu1 %v620_v13  ;;  %v250_v21 = vld [vmem:[%s788_s2 + $0x48] sm:$0xff]  ;;  %v626_v23 = vld [vmem:[%s786_s0 + $0x10] sm:$0xff]   ;;  %v252_v25 = vld [vmem:[%s788_s2 + $0x58] sm:$0xff] }
  0x19   :  { %v627_v24 = vld [vmem:[%s786_s0 + $0x30] sm:$0xff]   ;;  %v628_v27 = vld [vmem:[%s786_s0 + $0x18] sm:$0xff]   ;;  %v254_v29 = vld [vmem:[%s788_s2 + $0x68] sm:$0xff] }
  0x1a   :  { %294 = vperm.xlu1 %613, %v248_v17   ;;  %289 = vperm.xlu0 %612, %v247_v18   ;;  %v251_v26 = vld [vmem:[%s788_s2 + $0x50] sm:$0xff]  ;;  %v629_v28 = vld [vmem:[%s786_s0 + $0x38] sm:$0xff]   ;;  %v253_v30 = vld [vmem:[%s788_s2 + $0x60] sm:$0xff]  ;;  %s655_s0 = smov [#allocation2]  }
  0x1b   :  { %573 = vmatpush3.bf16.msra.mxu0 %v620_v13  ;;  %606 = vmatpush3.bf16.msra.mxu1 %v620_v13  ;;  %v256_v31 = vld [vmem:[%s788_s2 + $0x78] sm:$0xff]  ;;  %v255_v32 = vld [vmem:[%s788_s2 + $0x70] sm:$0xff]  ;;  %s438_s2 = sshll.u32 %s655_s0, 4  ;;  %s439_s2 = int_to_ptr.vmem [resolvable:$true] %s438_s2 }
  0x1c   :  { %574 = vmatprep.subr.bf16.mxu0 %v621_v16  ;;  %599 = vmatprep.subr.bf16.mxu1 %v621_v16  ;;  %s630_s21 = scalar_lea.vmem %s439_s2, 1024  ;;  %p635_p1 = scmp.lt.s32.totalorder %s439_s2, %s439_s2 }
  0x1d   :  { %p631_p0 = scmp.ne.s32.totalorder %s439_s2, %s630_s21  ;;  %p636_p2 = scmp.lt.s32.totalorder %s630_s21, %s630_s21 }
  0x1e   :  { %304 = vperm.xlu1 %613, %v250_v21   ;;  %299 = vperm.xlu0 %612, %v249_v22  }
  0x1f   :  { %575 = vmatpush3.bf16.msra.mxu0 %v621_v16  ;;  %607 = vmatpush3.bf16.msra.mxu1 %v621_v16  ;;  %p637_p3 = por %p636_p2, %p635_p1 }
  0x21   :  { %p638_p4 = pnand %p637_p3, %p631_p0 }
  0x22   :  { %577 = vmatmul.mubr.bf16.vlgmr.msra.gmra.mrb[0].mxu0 %v624_v19  ;;  %585 = vmatmul.mubr.bf16.vlgmr.msra.gmra.mrb[0].mxu1 %v625_v20 }
  0x23   :  { %580 = vmatprep.mubr.bf16.mxu0 %v626_v23  ;;  %588 = vmatprep.mubr.bf16.mxu1 %v627_v24 }
  0x24   :  { %314 = vperm.xlu1 %613, %v252_v25   ;;  %309 = vperm.xlu0 %612, %v251_v26  }
  0x28   :  { %324 = vperm.xlu1 %613, %v254_v29   ;;  %319 = vperm.xlu0 %612, %v253_v30  }
  0x2a   :  { %581 = vmatmul.mubr.bf16.gmra.mrb[4].mxu0 %v628_v27  ;;  %589 = vmatmul.mubr.bf16.gmra.mrb[4].mxu1 %v629_v28 }
  0x2c   :  { %334 = vperm.xlu1 %613, %v256_v31   ;;  %329 = vperm.xlu0 %612, %v255_v32  }
  0x85   :  { %v270_v33 = vpop.permute.xlu1 %269  ;;  %v260_v34 = vpop.permute.xlu0 %259 }
  0x89   :  { %v275_v35 = vpop.permute.xlu1 %274  ;;  %v265_v36 = vpop.permute.xlu0 %264 }
  0x95   :  { %v285_v37 = vpop.permute.xlu1 %284  ;;  %v280_v38 = vpop.permute.xlu0 %279 }
  0x99   :  { %v295_v39 = vpop.permute.xlu1 %294  ;;  %v290_v40 = vpop.permute.xlu0 %289 }
  0x9d   :  { %v305_v41 = vpop.permute.xlu1 %304  ;;  %v300_v42 = vpop.permute.xlu0 %299 }
  0xa3   :  { %v315_v43 = vpop.permute.xlu1 %314  ;;  %v310_v44 = vpop.permute.xlu0 %309 }
  0xa7   :  { %v325_v45 = vpop.permute.xlu1 %324  ;;  %v320_v46 = vpop.permute.xlu0 %319 }
  0xab   :  { %v335_v3 = vpop.permute.xlu1 %334  ;;  %v330_v4 = vpop.permute.xlu0 %329 }
  0xf5   :  { %v578_v47 = vpop.f32.mrb[0].mxu0  ;;  %v586_v48 = vpop.f32.mrb[0].mxu1 }
  0xf6   :  { %v178_v49 = vpop.f32.mrb[1].mxu0  ;;  %v210_v50 = vpop.f32.mrb[1].mxu1  ;;  %v339_v53 = vmul.f32 %v578_v47, %v270_v33  ;;  %v347_v54 = vmul.f32 %v586_v48, %v310_v44 }
  0xf7   :  { %v579_v51 = vpop.f32.mrb[2].mxu0  ;;  %v587_v52 = vpop.f32.mrb[2].mxu1  ;;  %v337_v59 = vmul.f32 %v260_v34, %v178_v49  ;;  %v345_v60 = vmul.f32 %v300_v42, %v210_v50 }
  0xf8   :  { %v340_v55 = vmul.f32 %v579_v51, %v275_v35  ;;  %v348_v56 = vmul.f32 %v587_v52, %v315_v43  ;;  %v181_v57 = vpop.f32.mrb[3].mxu0  ;;  %v213_v58 = vpop.f32.mrb[3].mxu1 }
  0xf9   :  { %v338_v61 = vmul.f32 %v265_v36, %v181_v57  ;;  %v346_v62 = vmul.f32 %v305_v41, %v213_v58 }
  0xfa   :  { %v505_v63 = vpack.c.bf16 %v340_v55, %v339_v53  ;;  %v525_v0 = vpack.c.bf16 %v348_v56, %v347_v54 }
  0xfb   :  { %v500_v1 = vpack.c.bf16 %v338_v61, %v337_v59  ;;  %v520_v2 = vpack.c.bf16 %v346_v62, %v345_v60 }
  0xfc   :  { %537 = vst [vmem:[#allocation2 + $0x8] sm:$0xff] %v505_v63   ;;  %541 = vst [vmem:[#allocation2 + $0x28] sm:$0xff] %v525_v0  }
  0xfd   :  { %501 = vst [vmem:[#allocation2] sm:$0xff] %v500_v1   ;;  %540 = vst [vmem:[#allocation2 + $0x20] sm:$0xff] %v520_v2   ;;  %v582_v5 = vpop.f32.mrb[4].mxu0  ;;  %v590_v6 = vpop.f32.mrb[4].mxu1 }
  0xfe   :  { %v194_v7 = vpop.f32.mrb[5].mxu0  ;;  %v226_v8 = vpop.f32.mrb[5].mxu1  ;;  %v343_v11 = vmul.f32 %v582_v5, %v290_v40  ;;  %v351_v12 = vmul.f32 %v590_v6, %v330_v4 }
  0xff   :  { %v583_v9 = vpop.f32.mrb[6].mxu0  ;;  %v591_v10 = vpop.f32.mrb[6].mxu1  ;;  %v341_v17 = vmul.f32 %v280_v38, %v194_v7  ;;  %v349_v18 = vmul.f32 %v320_v46, %v226_v8 }
 0x100   :  { %v344_v13 = vmul.f32 %v583_v9, %v295_v39  ;;  %v352_v14 = vmul.f32 %v591_v10, %v335_v3  ;;  %v197_v15 = vpop.f32.mrb[7].mxu0  ;;  %v229_v16 = vpop.f32.mrb[7].mxu1 }
 0x101   :  { %v342_v19 = vmul.f32 %v285_v37, %v197_v15  ;;  %v350_v20 = vmul.f32 %v325_v45, %v229_v16 }
 0x102   :  { %v515_v21 = vpack.c.bf16 %v344_v13, %v343_v11  ;;  %v535_v22 = vpack.c.bf16 %v352_v14, %v351_v12 }
 0x103   :  { %v510_v23 = vpack.c.bf16 %v342_v19, %v341_v17  ;;  %v530_v24 = vpack.c.bf16 %v350_v20, %v349_v18 }
 0x104   :  { %539 = vst [vmem:[#allocation2 + $0x18] sm:$0xff] %v515_v21   ;;  %543 = vst [vmem:[#allocation2 + $0x38] sm:$0xff] %v535_v22  }
 0x105   :  { %538 = vst [vmem:[#allocation2 + $0x10] sm:$0xff] %v510_v23   ;;  %542 = vst [vmem:[#allocation2 + $0x30] sm:$0xff] %v530_v24  }
 0x106   :  { %641 = shalt.err (!%p638_p4)
}
 0x107   :  { %s642_s23 = scalar_lea.hbm %s789_s3, 1024 }
 0x108   :  { %p643_p5 = scmp.ne.s32.totalorder %s789_s3, %s642_s23  ;;  %p646_p6 = scmp.lt.u32.totalorder %s642_s23, %s789_s3 }
 0x10a   :  { %p648_p7 = pnand %p646_p6, %p643_p5 }
 0x10c   :  { %651 = shalt.err (!%p648_p7)
}
 0x10d   :  { %s656_s28 = smov 64   ;;  %s657_s29 = smov 4  }
 0x10e   :  { %444 = dma.vmem_to_hbm [thread:$0]  %s439_s2, 1024, %s789_s3, [#allocation3], %s656_s28, %s656_s28, %s657_s29  }
 0x10f   :  { %652 = dma.done.wait [#allocation3], 1024  }
 0x110   :  { %653 = vsyncadd [#allocation3], 4294966272 }
 0x111   :  { %448 = vsyncpa [#allocation3], 1 }

</bundles_post_ra>
